<compile_context>
chip_gen: v7x
topology: tpu7x:2x2x1
jax: 0.10.0
libtpu: 0.0.40
codegen_flags: <defaults>
</compile_context>

<pallas_src>
import jax
import jax.numpy as jnp
from jax.experimental import pallas as pl
from jax.experimental.pallas import tpu as pltpu


# ---------------------------------------------------------------------------
# Path 1: zero-copy identity — output aliases the input HBM buffer.
# ---------------------------------------------------------------------------
def _alias_identity_kernel(x_ref, o_ref):
    # No arithmetic, no data movement: the output is the same HBM buffer as
    # the input.  `touch` just gives the aliased output a (fake) write dep so
    # it is considered produced by this kernel.
    del x_ref
    pltpu.touch(o_ref)


def _pallas_alias_identity(x2):
    return pl.pallas_call(
        _alias_identity_kernel,
        out_shape=jax.ShapeDtypeStruct(x2.shape, x2.dtype),
        in_specs=[pl.BlockSpec(memory_space=pl.ANY)],
        out_specs=pl.BlockSpec(memory_space=pl.ANY),
        input_output_aliases={0: 0},
    )(x2)


_ALIAS_PATH_OK = None


def _alias_path_available():
    """Probe once that the aliasing path compiles, runs and is bit-exact."""
    global _ALIAS_PATH_OK
    if _ALIAS_PATH_OK is None:
        try:
            probe = jnp.arange(8 * 128, dtype=jnp.float32).reshape(8, 128)
            out = jax.block_until_ready(_pallas_alias_identity(probe))
            _ALIAS_PATH_OK = bool(jnp.array_equal(out, probe))
        except Exception:
            _ALIAS_PATH_OK = False
    return _ALIAS_PATH_OK


# ---------------------------------------------------------------------------
# Path 2: blocked streaming copy (used only when aliasing is unavailable).
# ---------------------------------------------------------------------------
_TARGET_BLOCK_BYTES = 2 * 1024 * 1024  # ~2 MiB blocks; 4 pipeline buffers = 8 MiB VMEM.


def _copy_kernel(x_ref, o_ref):
    # Pure copy: flatten(1) has no arithmetic.  Lane-/sublane-dense full block.
    o_ref[...] = x_ref[...]


def _choose_block(rows, cols, itemsize):
    """Pick (block_rows, block_cols): lane dim a large multiple of 128 (or the
    full extent), sublane dim a multiple of the native packing (8/16/32 for
    f32/bf16/int8) or the full extent, sized to ~_TARGET_BLOCK_BYTES."""
    target_elems = max(1, _TARGET_BLOCK_BYTES // itemsize)
    row_mult = max(8, 32 // itemsize) if itemsize <= 4 else 8
    bc_cap = max(128, (target_elems // row_mult) // 128 * 128)
    bc = cols if cols <= bc_cap else bc_cap          # full extent or 128-multiple
    br_want = max(1, target_elems // bc)
    if br_want >= rows:
        br = rows                                    # full extent
    else:
        br = max(row_mult, (br_want // row_mult) * row_mult)
        br = min(br, rows)
    return br, bc


def _pallas_blocked_copy(a):
    rows, cols = a.shape
    itemsize = jnp.dtype(a.dtype).itemsize
    br, bc = _choose_block(rows, cols, itemsize)
    grid = (pl.cdiv(rows, br), pl.cdiv(cols, bc))    # cdiv: tail blocks are masked
    return pl.pallas_call(
        _copy_kernel,
        out_shape=jax.ShapeDtypeStruct((rows, cols), a.dtype),
        grid=grid,
        in_specs=[pl.BlockSpec((br, bc), lambda i, j: (i, j))],
        out_specs=pl.BlockSpec((br, bc), lambda i, j: (i, j)),
        compiler_params=pltpu.CompilerParams(
            # Pure copy — both axes independent; lets v7x's two TCs split the work.
            dimension_semantics=("parallel", "parallel"),
            # Explicit limit so >=2 MiB blocks also compile on v5e (16 MiB default).
            vmem_limit_bytes=32 * 1024 * 1024,
        ),
    )(a)


def _pick_slab_shape(total):
    """Re-pack the flat element stream as a (rows, lanes) slab with lanes a
    multiple of 128 and >= 8 rows, so vregs/VMEM are densely occupied."""
    if total <= 0 or total % (8 * 128) != 0:
        return None
    for lanes in (2048, 1024, 512, 256, 128):
        if total % lanes == 0 and total // lanes >= 8:
            return (total // lanes, lanes)
    return None


# ---------------------------------------------------------------------------
# Public wrapper: x.flatten(1)
# ---------------------------------------------------------------------------
def flat_forward(x, *, use_alias=True):
    """x: (N, d1, d2, ...) -> (N, d1*d2*...)   (== torch.flatten(x, 1))."""
    assert x.ndim >= 2, "flatten(1) needs at least 2 dims"
    n = x.shape[0]
    f = 1
    for d in x.shape[1:]:
        f *= d

    # Metadata-only view for a contiguous input; the Pallas call below either
    # aliases it (zero traffic) or streams it through VMEM in dense blocks.
    x2 = jnp.reshape(x, (n, f))
    if n == 0 or f == 0:
        return x2

    if use_alias and _alias_path_available():
        return _pallas_alias_identity(x2)

    # Streaming-copy fallback: decouple block geometry from (N, F) by
    # re-flattening to a dense slab whenever the element count allows it.
    slab_shape = _pick_slab_shape(n * f)
    if slab_shape is not None:
        out = _pallas_blocked_copy(jnp.reshape(x2, slab_shape))
        return jnp.reshape(out, (n, f))
    return _pallas_blocked_copy(x2)


if __name__ == "__main__":
    N, C, H, W = 2, 4, 16, 16
    key = jax.random.PRNGKey(0)
    x = jax.random.normal(key, (N, C, H, W), dtype=jnp.float32)
    ref = jnp.reshape(x, (N, C * H * W))          # == torch.flatten(x, 1)

    # Primary (zero-copy aliasing) path.
    out = jax.block_until_ready(flat_forward(x))
    assert out.shape == (N, C * H * W), out.shape
    assert jnp.array_equal(out, ref)

    # Streaming-copy path (exercised explicitly for coverage).
    out_copy = jax.block_until_ready(flat_forward(x, use_alias=False))
    assert jnp.array_equal(out_copy, ref)

    # Ragged shape (feature dim not a multiple of 128) -> masked-tail copy path.
    y = jax.random.normal(jax.random.PRNGKey(0), (3, 5, 7), dtype=jnp.float32)
    out_y = jax.block_until_ready(flat_forward(y, use_alias=False))
    assert jnp.array_equal(out_y, jnp.reshape(y, (3, 35)))

    print("KERNEL_OK")
</pallas_src>

<mosaic_0001>
module attributes {stable_mosaic.version = 11 : i64} {
  func.func @_alias_identity_kernel(%arg0: memref<8x128xf32, #tpu.memory_space<any>>, %arg1: memref<8x128xf32, #tpu.memory_space<any>>) attributes {dimension_semantics = [], scalar_prefetch = 0 : i64, scratch_operands = 0 : i64, tpu.core_type = #tpu.core_type<tc>} {
    return
  }
}

module attributes {stable_mosaic.version = 11 : i64} {
  func.func @_copy_kernel(%arg0: i32, %arg1: i32, %arg2: memref<8x256xf32, #tpu.memory_space<vmem>>, %arg3: memref<8x256xf32, #tpu.memory_space<vmem>>) attributes {dimension_semantics = [#tpu.dimension_semantics<parallel>, #tpu.dimension_semantics<parallel>], iteration_bounds = array<i64: 1, 1>, scalar_prefetch = 0 : i64, scratch_operands = 0 : i64, tpu.core_type = #tpu.core_type<tc>, window_params = [{transform_indices = @transform_0, window_bounds = array<i64: 8, 256>}, {transform_indices = @transform_1, window_bounds = array<i64: 8, 256>}]} {
    %c0 = arith.constant 0 : index
    %c0_0 = arith.constant 0 : index
    %0 = vector.load %arg2[%c0, %c0_0] : memref<8x256xf32, #tpu.memory_space<vmem>>, vector<8x256xf32>
    %c0_1 = arith.constant 0 : index
    %c0_2 = arith.constant 0 : index
    %1 = vector.load %arg3[%c0_1, %c0_2] : memref<8x256xf32, #tpu.memory_space<vmem>>, vector<8x256xf32>
    tpu.vector_store %arg3[%c0_1, %c0_2], %0 {strides = array<i32>} : memref<8x256xf32, #tpu.memory_space<vmem>>, vector<8x256xf32>,
    return
  }
  func.func @transform_0(%arg0: i32, %arg1: i32) -> (i32, i32) {
    %c0_i32 = arith.constant 0 : i32
    return %arg0, %arg1 : i32, i32
  }
  func.func @transform_1(%arg0: i32, %arg1: i32) -> (i32, i32) {
    %c0_i32 = arith.constant 0 : i32
    return %arg0, %arg1 : i32, i32
  }
}

</mosaic_0001>

<bundles_post_ra>
// kernel: tpu_custom_call.1
= control target key start
LH: loop header
LB: loop body
LE: loop exit
PB: predicated region body
PF: predicated region fallthrough
CT: control target
= control target key end

     0   :  { %s16_s0 = inlined_call_operand.hbm [shape: f32[8,128], index: 0, kind: input, shape index: {}, may-alias: {0,1}]   ;;  %s17_s1 = inlined_call_operand.hbm [shape: f32[8,128], index: 1, kind: output, shape index: {}, may-alias: {0,1}]  }

// kernel: tpu_custom_call.1
= control target key start
LH: loop header
LB: loop body
LE: loop exit
PB: predicated region body
PF: predicated region fallthrough
CT: control target
= control target key end

     0   :  { %6 = vsyncpa [#allocation3], 0  ;;  %s126_s0 = inlined_call_operand.hbm [shape: f32[8,256], index: 0, kind: input, shape index: {}]   ;;  %s127_s1 = inlined_call_operand.hbm [shape: f32[8,256], index: 1, kind: output, shape index: {}]  }
   0x1   :  { %7 = vsyncpa [#allocation4], 0  ;;  %s90_s6 = smov [#allocation2]   ;;  %s42_s10 = scalar_lea.hbm %s126_s0, 256 }
   0x2   :  { %s14_s7 = sshll.u32 %s90_s6, 4  ;;  %p43_p0 = scmp.ne.s32.totalorder %s126_s0, %s42_s10  ;;  %s15_s7 = int_to_ptr.vmem [resolvable:$true] %s14_s7 }
   0x3   :  { %p46_p1 = scmp.lt.u32.totalorder %s42_s10, %s126_s0 }
   0x5   :  { %p48_p2 = pnand %p46_p1, %p43_p0 }
   0x7   :  { %51 = shalt.err (!%p48_p2)
}
   0x8   :  { %s52_s15 = scalar_lea.vmem %s15_s7, 256  ;;  %p57_p4 = scmp.lt.s32.totalorder %s15_s7, %s15_s7 }
   0x9   :  { %p53_p3 = scmp.ne.s32.totalorder %s15_s7, %s52_s15  ;;  %p58_p5 = scmp.lt.s32.totalorder %s52_s15, %s52_s15 }
   0xb   :  { %p59_p6 = por %p58_p5, %p57_p4 }
   0xd   :  { %p60_p7 = pnand %p59_p6, %p53_p3 }
   0xf   :  { %63 = shalt.err (!%p60_p7)
}
  0x10   :  { %17 = dma.hbm_to_vmem [thread:$0]  %s126_s0, 256, %s15_s7, [#allocation3]  }
  0x11   :  { %86 = dma.done.wait [#allocation3], 256  }
  0x12   :  { %87 = vsyncadd [#allocation3], 4294967040  ;;  %s91_s18 = smov [#allocation5]   ;;  %v21_v0 = vld [vmem:[#allocation2] sm:$0xff]  ;;  %v22_v1 = vld [vmem:[#allocation2 + $0x8] sm:$0xff] }
  0x13   :  { %s31_s19 = sshll.u32 %s91_s18, 4  ;;  %23 = vst [vmem:[#allocation5] sm:$0xff] %v21_v0  ;;  %24 = vst [vmem:[#allocation5 + $0x8] sm:$0xff] %v22_v1  ;;  %s32_s19 = int_to_ptr.vmem [resolvable:$true] %s31_s19 }
  0x14   :  { %s64_s20 = scalar_lea.vmem %s32_s19, 256  ;;  %p69_p9 = scmp.lt.s32.totalorder %s32_s19, %s32_s19 }
  0x15   :  { %p65_p8 = scmp.ne.s32.totalorder %s32_s19, %s64_s20  ;;  %p70_p10 = scmp.lt.s32.totalorder %s64_s20, %s64_s20 }
  0x17   :  { %p71_p11 = por %p70_p10, %p69_p9 }
  0x19   :  { %p72_p12 = pnand %p71_p11, %p65_p8 }
  0x1b   :  { %75 = shalt.err (!%p72_p12)
}
  0x1c   :  { %s76_s0 = scalar_lea.hbm %s127_s1, 256 }
  0x1d   :  { %p77_p13 = scmp.ne.s32.totalorder %s127_s1, %s76_s0  ;;  %p80_p0 = scmp.lt.u32.totalorder %s76_s0, %s127_s1 }
  0x1f   :  { %p82_p1 = pnand %p80_p0, %p77_p13 }
  0x21   :  { %85 = shalt.err (!%p82_p1)
}
  0x22   :  { %34 = dma.vmem_to_hbm [thread:$0]  %s32_s19, 256, %s127_s1, [#allocation4]  }
  0x23   :  { %88 = dma.done.wait [#allocation4], 256  }
  0x24   :  { %89 = vsyncadd [#allocation4], 4294967040 }
  0x25   :  { %38 = vsyncpa [#allocation3], 1 }
  0x26   :  { %39 = vsyncpa [#allocation4], 1 }

</bundles_post_ra>
